<compile_context>
chip_gen: v7x
topology: tpu7x:2x2x1
jax: 0.10.0
libtpu: 0.0.40
codegen_flags: <defaults>
</compile_context>

<pallas_src>
import jax
import jax.numpy as jnp
from jax.experimental import pallas as pl
from jax.experimental.pallas import tpu as pltpu


def _mlp_kernel(x_ref, w1_ref, b1_ref, w2_ref, b2_ref, w3_ref, b3_ref, o_ref):
    x = x_ref[0]                                               # (F_in_p, Tt) bf16
    # Layer 1: Linear + ReLU (Dropout is identity in eval mode)
    h = jnp.dot(w1_ref[...], x, preferred_element_type=jnp.float32)
    h = jnp.maximum(h + b1_ref[...], 0.0)                      # f32 epilogue
    # Layer 2: Linear + ReLU
    h = jnp.dot(w2_ref[...], h.astype(jnp.bfloat16),
                preferred_element_type=jnp.float32)
    h = jnp.maximum(h + b2_ref[...], 0.0)
    # Output layer: Linear + Sigmoid
    y = jnp.dot(w3_ref[...], h.astype(jnp.bfloat16),
                preferred_element_type=jnp.float32) + b3_ref[...]
    o_ref[0] = jax.nn.sigmoid(y).astype(o_ref.dtype)           # (F_out_p, Tt)


def _ceil_to(v, m):
    return ((v + m - 1) // m) * m


def _pad2(a, rows, cols):
    return jnp.pad(a, ((0, rows - a.shape[0]), (0, cols - a.shape[1])))


def dnn_forward(x, params, *, t_tile=512):
    """x: (B, input_size, T) float32. Returns (B, output_size, T) float32."""
    w1, b1, w2, b2, w3, b3 = params
    B, F_in, T = x.shape
    H1, H2, F_out = w1.shape[1], w2.shape[1], w3.shape[1]

    LANE = 128
    F_in_p = _ceil_to(F_in, LANE)
    H1_p = _ceil_to(H1, LANE)
    H2_p = _ceil_to(H2, LANE)
    F_out_p = _ceil_to(F_out, LANE)
    T_TILE = min(t_tile, _ceil_to(T, LANE))     # lane-dense time tile (>=128)
    T_p = _ceil_to(T, T_TILE)

    # Activations: pad features/time with zeros, cast to bf16 for the MXU.
    x_p = jnp.pad(x, ((0, 0), (0, F_in_p - F_in), (0, T_p - T))).astype(jnp.bfloat16)

    # Weights pre-transposed to (out, in) so the kernel computes W^T @ x.
    w1t = _pad2(w1, F_in_p, H1_p).T.astype(jnp.bfloat16)       # (H1_p,  F_in_p)
    w2t = _pad2(w2, H1_p, H2_p).T.astype(jnp.bfloat16)         # (H2_p,  H1_p)
    w3t = _pad2(w3, H2_p, F_out_p).T.astype(jnp.bfloat16)      # (F_out_p, H2_p)
    b1c = _pad2(b1, 1, H1_p).T.astype(jnp.float32)             # (H1_p,  1)
    b2c = _pad2(b2, 1, H2_p).T.astype(jnp.float32)             # (H2_p,  1)
    b3c = _pad2(b3, 1, F_out_p).T.astype(jnp.float32)          # (F_out_p, 1)

    grid = (B, T_p // T_TILE)

    # VMEM budget: double-buffered x/out blocks + resident weights/biases.
    blk_bytes = F_in_p * T_TILE * 2 + F_out_p * T_TILE * 4
    wgt_bytes = 2 * (H1_p * F_in_p + H2_p * H1_p + F_out_p * H2_p)
    bias_bytes = 4 * LANE * (H1_p + H2_p + F_out_p)            # (H,1) pads to 128 lanes
    vmem_limit = int(min(48 * 2 ** 20,
                         max(4 * 2 ** 20,
                             4 * blk_bytes + 2 * (wgt_bytes + bias_bytes))))

    out_p = pl.pallas_call(
        _mlp_kernel,
        out_shape=jax.ShapeDtypeStruct((B, F_out_p, T_p), jnp.float32),
        grid_spec=pltpu.PrefetchScalarGridSpec(
            num_scalar_prefetch=0,
            grid=grid,
            in_specs=[
                pl.BlockSpec((1, F_in_p, T_TILE), lambda b, t: (b, 0, t)),  # x block
                pl.BlockSpec((H1_p, F_in_p), lambda b, t: (0, 0)),          # W1^T
                pl.BlockSpec((H1_p, 1), lambda b, t: (0, 0)),               # b1
                pl.BlockSpec((H2_p, H1_p), lambda b, t: (0, 0)),            # W2^T
                pl.BlockSpec((H2_p, 1), lambda b, t: (0, 0)),               # b2
                pl.BlockSpec((F_out_p, H2_p), lambda b, t: (0, 0)),         # W3^T
                pl.BlockSpec((F_out_p, 1), lambda b, t: (0, 0)),            # b3
            ],
            out_specs=pl.BlockSpec((1, F_out_p, T_TILE), lambda b, t: (b, 0, t)),
        ),
        compiler_params=pltpu.CompilerParams(
            dimension_semantics=("parallel", "parallel"),
            vmem_limit_bytes=vmem_limit,
        ),
    )(x_p, w1t, b1c, w2t, b2c, w3t, b3c)

    # Slice away feature/time padding.
    return out_p[:, :F_out, :T]


def init_params(key, input_size, hidden_layers, output_size):
    """Deterministic init mimicking nn.Linear default (uniform +-1/sqrt(fan_in))."""
    sizes = [input_size] + list(hidden_layers) + [output_size]
    params = []
    for i in range(len(sizes) - 1):
        fan_in, fan_out = sizes[i], sizes[i + 1]
        key, kw, kb = jax.random.split(key, 3)
        bound = 1.0 / jnp.sqrt(fan_in)
        w = jax.random.uniform(kw, (fan_in, fan_out), jnp.float32, -bound, bound)
        b = jax.random.uniform(kb, (1, fan_out), jnp.float32, -bound, bound)
        params += [w, b]
    return tuple(params)


def reference_forward(x, params):
    """Pure-JAX f32 reference matching the PyTorch module (eval mode)."""
    w1, b1, w2, b2, w3, b3 = params
    h = jnp.transpose(x, (0, 2, 1))              # (B, T, F)
    h = jnp.maximum(h @ w1 + b1[0], 0.0)
    h = jnp.maximum(h @ w2 + b2[0], 0.0)
    y = jax.nn.sigmoid(h @ w3 + b3[0])
    return jnp.transpose(y, (0, 2, 1))           # (B, F_out, T)


if __name__ == "__main__":
    key = jax.random.PRNGKey(0)
    B, input_size, T = 2, 32, 8
    hidden_layers = [64, 64]
    output_size = 16

    kx, kp = jax.random.split(key)
    x = jax.random.normal(kx, (B, input_size, T), jnp.float32)
    params = init_params(kp, input_size, hidden_layers, output_size)

    out = dnn_forward(x, params)
    out = jax.block_until_ready(out)

    ref = reference_forward(x, params)
    assert out.shape == (B, output_size, T), out.shape
    # bf16 MXU inputs with f32 accumulation: allow ~1e-2 absolute on a
    # sigmoid-bounded (0,1) output.
    assert jnp.allclose(out, ref, atol=2e-2, rtol=0.0), "mismatch vs reference"

    print("KERNEL_OK")
</pallas_src>

<mosaic_0001>
module attributes {stable_mosaic.version = 11 : i64} {
  func.func @_mlp_kernel(%arg0: i32, %arg1: i32, %arg2: memref<1x128x128xbf16, #tpu.memory_space<vmem>>, %arg3: memref<128x128xbf16, #tpu.memory_space<vmem>>, %arg4: memref<128x1xf32, #tpu.memory_space<vmem>>, %arg5: memref<128x128xbf16, #tpu.memory_space<vmem>>, %arg6: memref<128x1xf32, #tpu.memory_space<vmem>>, %arg7: memref<128x128xbf16, #tpu.memory_space<vmem>>, %arg8: memref<128x1xf32, #tpu.memory_space<vmem>>, %arg9: memref<1x128x128xf32, #tpu.memory_space<vmem>>) attributes {dimension_semantics = [#tpu.dimension_semantics<parallel>, #tpu.dimension_semantics<parallel>], iteration_bounds = array<i64: 2, 1>, scalar_prefetch = 0 : i64, scratch_operands = 0 : i64, tpu.core_type = #tpu.core_type<tc>, window_params = [{transform_indices = @transform_0, window_bounds = array<i64: 1, 128, 128>}, {pipeline_mode = #tpu.pipeline_mode<synchronous>, transform_indices = @transform_1, window_bounds = array<i64: 128, 128>}, {pipeline_mode = #tpu.pipeline_mode<synchronous>, transform_indices = @transform_2, window_bounds = array<i64: 128, 1>}, {pipeline_mode = #tpu.pipeline_mode<synchronous>, transform_indices = @transform_3, window_bounds = array<i64: 128, 128>}, {pipeline_mode = #tpu.pipeline_mode<synchronous>, transform_indices = @transform_4, window_bounds = array<i64: 128, 1>}, {pipeline_mode = #tpu.pipeline_mode<synchronous>, transform_indices = @transform_5, window_bounds = array<i64: 128, 128>}, {pipeline_mode = #tpu.pipeline_mode<synchronous>, transform_indices = @transform_6, window_bounds = array<i64: 128, 1>}, {transform_indices = @transform_7, window_bounds = array<i64: 1, 128, 128>}]} {
    %c0 = arith.constant 0 : index
    %c0_0 = arith.constant 0 : index
    %c0_1 = arith.constant 0 : index
    %0 = vector.load %arg2[%c0, %c0_0, %c0_1] : memref<1x128x128xbf16, #tpu.memory_space<vmem>>, vector<1x128x128xbf16>
    %1 = vector.shape_cast %0 : vector<1x128x128xbf16> to vector<128x128xbf16>
    %c0_2 = arith.constant 0 : index
    %c0_3 = arith.constant 0 : index
    %2 = vector.load %arg3[%c0_2, %c0_3] : memref<128x128xbf16, #tpu.memory_space<vmem>>, vector<128x128xbf16>
    %cst = arith.constant dense<0.000000e+00> : vector<128x128xf32>
    %3 = tpu.matmul %2, %1, %cst {dimension_numbers = #tpu.dot_dimension_numbers<[1], [0], [0], [1], [0, 0, 1, 1], [], []>} : vector<128x128xbf16>, vector<128x128xbf16>, vector<128x128xf32> -> vector<128x128xf32>
    %c0_4 = arith.constant 0 : index
    %c0_5 = arith.constant 0 : index
    %4 = vector.load %arg4[%c0_4, %c0_5] : memref<128x1xf32, #tpu.memory_space<vmem>>, vector<128x1xf32>
    %5 = vector.broadcast %4 : vector<128x1xf32> to vector<128x128xf32>
    %6 = arith.addf %3, %5 : vector<128x128xf32>
    %cst_6 = arith.constant 0.000000e+00 : f32
    %7 = vector.broadcast %cst_6 : f32 to vector<128x128xf32>
    %8 = arith.maximumf %6, %7 : vector<128x128xf32>
    %c0_7 = arith.constant 0 : index
    %c0_8 = arith.constant 0 : index
    %9 = vector.load %arg5[%c0_7, %c0_8] : memref<128x128xbf16, #tpu.memory_space<vmem>>, vector<128x128xbf16>
    %10 = arith.truncf %8 : vector<128x128xf32> to vector<128x128xbf16>
    %cst_9 = arith.constant dense<0.000000e+00> : vector<128x128xf32>
    %11 = tpu.matmul %9, %10, %cst_9 {dimension_numbers = #tpu.dot_dimension_numbers<[1], [0], [0], [1], [0, 0, 1, 1], [], []>} : vector<128x128xbf16>, vector<128x128xbf16>, vector<128x128xf32> -> vector<128x128xf32>
    %c0_10 = arith.constant 0 : index
    %c0_11 = arith.constant 0 : index
    %12 = vector.load %arg6[%c0_10, %c0_11] : memref<128x1xf32, #tpu.memory_space<vmem>>, vector<128x1xf32>
    %13 = vector.broadcast %12 : vector<128x1xf32> to vector<128x128xf32>
    %14 = arith.addf %11, %13 : vector<128x128xf32>
    %cst_12 = arith.constant 0.000000e+00 : f32
    %15 = vector.broadcast %cst_12 : f32 to vector<128x128xf32>
    %16 = arith.maximumf %14, %15 : vector<128x128xf32>
    %c0_13 = arith.constant 0 : index
    %c0_14 = arith.constant 0 : index
    %17 = vector.load %arg7[%c0_13, %c0_14] : memref<128x128xbf16, #tpu.memory_space<vmem>>, vector<128x128xbf16>
    %18 = arith.truncf %16 : vector<128x128xf32> to vector<128x128xbf16>
    %cst_15 = arith.constant dense<0.000000e+00> : vector<128x128xf32>
    %19 = tpu.matmul %17, %18, %cst_15 {dimension_numbers = #tpu.dot_dimension_numbers<[1], [0], [0], [1], [0, 0, 1, 1], [], []>} : vector<128x128xbf16>, vector<128x128xbf16>, vector<128x128xf32> -> vector<128x128xf32>
    %c0_16 = arith.constant 0 : index
    %c0_17 = arith.constant 0 : index
    %20 = vector.load %arg8[%c0_16, %c0_17] : memref<128x1xf32, #tpu.memory_space<vmem>>, vector<128x1xf32>
    %21 = vector.broadcast %20 : vector<128x1xf32> to vector<128x128xf32>
    %22 = arith.addf %19, %21 : vector<128x128xf32>
    %23 = arith.negf %22 : vector<128x128xf32>
    %24 = math.exp %23 : vector<128x128xf32>
    %cst_18 = arith.constant 1.000000e+00 : f32
    %25 = vector.broadcast %cst_18 : f32 to vector<128x128xf32>
    %26 = arith.addf %25, %24 : vector<128x128xf32>
    %27 = arith.divf %25, %26 : vector<128x128xf32>
    %c0_19 = arith.constant 0 : index
    %c0_20 = arith.constant 0 : index
    %c0_21 = arith.constant 0 : index
    %28 = vector.load %arg9[%c0_19, %c0_20, %c0_21] : memref<1x128x128xf32, #tpu.memory_space<vmem>>, vector<1x128x128xf32>
    %29 = vector.shape_cast %28 : vector<1x128x128xf32> to vector<128x128xf32>
    %30 = vector.shape_cast %27 : vector<128x128xf32> to vector<1x128x128xf32>
    tpu.vector_store %arg9[%c0_19, %c0_20, %c0_21], %30 {strides = array<i32>} : memref<1x128x128xf32, #tpu.memory_space<vmem>>, vector<1x128x128xf32>,
    return
  }
  func.func @transform_0(%arg0: i32, %arg1: i32) -> (i32, i32, i32) {
    %c0_i32 = arith.constant 0 : i32
    %c0_i32_0 = arith.constant 0 : i32
    return %arg0, %c0_i32, %arg1 : i32, i32, i32
  }
  func.func @transform_1(%arg0: i32, %arg1: i32) -> (i32, i32) {
    %c0_i32 = arith.constant 0 : i32
    %c0_i32_0 = arith.constant 0 : i32
    %c0_i32_1 = arith.constant 0 : i32
    return %c0_i32, %c0_i32_0 : i32, i32
  }
  func.func @transform_2(%arg0: i32, %arg1: i32) -> (i32, i32) {
    %c0_i32 = arith.constant 0 : i32
    %c0_i32_0 = arith.constant 0 : i32
    %c0_i32_1 = arith.constant 0 : i32
    return %c0_i32, %c0_i32_0 : i32, i32
  }
  func.func @transform_3(%arg0: i32, %arg1: i32) -> (i32, i32) {
    %c0_i32 = arith.constant 0 : i32
    %c0_i32_0 = arith.constant 0 : i32
    %c0_i32_1 = arith.constant 0 : i32
    return %c0_i32, %c0_i32_0 : i32, i32
  }
  func.func @transform_4(%arg0: i32, %arg1: i32) -> (i32, i32) {
    %c0_i32 = arith.constant 0 : i32
    %c0_i32_0 = arith.constant 0 : i32
    %c0_i32_1 = arith.constant 0 : i32
    return %c0_i32, %c0_i32_0 : i32, i32
  }
  func.func @transform_5(%arg0: i32, %arg1: i32) -> (i32, i32) {
    %c0_i32 = arith.constant 0 : i32
    %c0_i32_0 = arith.constant 0 : i32
    %c0_i32_1 = arith.constant 0 : i32
    return %c0_i32, %c0_i32_0 : i32, i32
  }
  func.func @transform_6(%arg0: i32, %arg1: i32) -> (i32, i32) {
    %c0_i32 = arith.constant 0 : i32
    %c0_i32_0 = arith.constant 0 : i32
    %c0_i32_1 = arith.constant 0 : i32
    return %c0_i32, %c0_i32_0 : i32, i32
  }
  func.func @transform_7(%arg0: i32, %arg1: i32) -> (i32, i32, i32) {
    %c0_i32 = arith.constant 0 : i32
    %c0_i32_0 = arith.constant 0 : i32
    return %arg0, %c0_i32, %arg1 : i32, i32, i32
  }
}

</mosaic_0001>

<bundles_post_ra>
// kernel: tpu_custom_call.1
= control target key start
LH: loop header
LB: loop body
LE: loop exit
PB: predicated region body
PF: predicated region fallthrough
CT: control target
= control target key end

     0   :  { %12 = vsyncpa [#allocation3], 0  ;;  %s2261_s0 = inlined_call_operand.vmem [shape: bf16[2,128,128], index: 0, kind: input, shape index: {}]   ;;  %s2262_s1 = inlined_call_operand.vmem [shape: bf16[128,128], index: 1, kind: input, shape index: {}]   ;;  %s2263_s2 = inlined_call_operand.vmem [shape: f32[128,1], index: 2, kind: input, shape index: {}]   ;;  %s2264_s3 = inlined_call_operand.vmem [shape: bf16[128,128], index: 3, kind: input, shape index: {}]   ;;  %s2265_s4 = inlined_call_operand.vmem [shape: f32[128,1], index: 4, kind: input, shape index: {}]   ;;  %s2266_s5 = inlined_call_operand.vmem [shape: bf16[128,128], index: 5, kind: input, shape index: {}]   ;;  %s2267_s6 = inlined_call_operand.vmem [shape: f32[128,1], index: 6, kind: input, shape index: {}]   ;;  %s2268_s7 = inlined_call_operand.hbm [shape: f32[2,128,128], index: 7, kind: output, shape index: {}]  }
   0x1   :  { %14 = vsyncpa [#allocation3 + $0x1], 0  ;;  %s1894_s24 = smov 0   ;;  %s1896_s25 = smov 0  }
   0x2   :  { %s1898_s26 = smov 0   ;;  %s1900_s27 = smov 0  }
   0x3   :  { %s1902_s28 = smov 0   ;;  %s1904_s29 = smov 0  }
   0x4 LB: > { %s1391_s30 = sadd.s32 4294967295, %s1848_s29   ;;  %s1392_s8 = sadd.s32 4294967294, %s1848_s29   ;;  %s1848_s29 = sphi %s1904_s29, %s20_s29   ;;  %s1844_s28 = sphi %s1902_s28, %s2275_s28   ;;  %s1840_s27 = sphi %s1900_s27, %s2274_s27   ;;  %s1836_s26 = sphi %s1898_s26, %s2273_s26   ;;  %s1832_s25 = sphi %s1896_s25, %s2272_s25   ;;  %s1828_s24 = sphi %s1894_s24, %s2271_s24  }
   0x5   : > { %s32_s9 = sadd.s32 1, %s1844_s28  ;;  %s195_s10 = sadd.s32 1, %s1836_s26 }
   0x6   : > { %p34_p0 = scmp.ge.s32.totalorder %s32_s9, 2  ;;  %p205_p1 = scmp.ne.s32.totalorder %s1836_s26, %s1832_s25 }
   0x7   : > { %p206_p2 = scmp.eq.s32.totalorder %s1391_s30, 1  ;;  %p211_p3 = scmp.ne.s32.totalorder %s1832_s25, %s1828_s24 }
   0x8   : > { %s2277_s9 = smov (%p34_p0, %s32_s9), 0  ;;  %p212_p5 = scmp.eq.s32.totalorder %s1392_s8, 1 }
   0x9   : > { %p1934_p4 = por %p206_p2, %p205_p1  ;;  %s190_s12 = ssub.s32 %s1844_s28, %s2277_s9 }
   0xa   : > { %p1395_p6 = scmp.ge.s32.totalorder %s1848_s29, 1  ;;  %p193_p7 = scmp.eq.s32.totalorder %s190_s12, 0 }
   0xb   : > { %p1941_p8 = por %p212_p5, %p211_p3  ;;  %p259_p9 = scmp.lt.s32.totalorder %s1848_s29, 3 }
   0xc   : > { %s1947_s14 = scalar_select %p193_p7, %s1836_s26, %s195_s10  }
   0xd   : > { %p260_p10 = pnand %p1395_p6, %p259_p9 }
   0xe   : > { %p294_p11 = scmp.lt.s32.totalorder (!%p260_p10), %s1840_s27, 1  ;;  %v335_v0 = vld [vmem:[%s2263_s2] sm:$0xff] (!%p260_p10)  ;;  %v337_v1 = vld [vmem:[%s2263_s2 + $0x10] sm:$0xff] (!%p260_p10)  ;;  %v1850_v2 = vmov (!%p260_p10), 0   ;;  %v336_v4 = vld [vmem:[%s2263_s2 + $0x8] sm:$0xff] (!%p260_p10)  ;;  %s291_s23 = sand.u32 (!%p260_p10), 1, %s1832_s25  }
   0xf   : > { %263 = sbr.rel (%p260_p10) target bundleno = 848 (0x350), region = 48  ;;  %1672 = vset.pattern.permute.xlu0 (!%p260_p10), %v1850_v2  ;;  %1673 = vset.pattern.permute.xlu1 (!%p260_p10), %v1850_v2  ;;  %v1682_v3 = vld [vmem:[%s2262_s1] sm:$0xff] (!%p260_p10)   ;;  %v338_v5 = vld [vmem:[%s2263_s2 + $0x18] sm:$0xff] (!%p260_p10)  ;;  %v340_v9 = vld [vmem:[%s2263_s2 + $0x28] sm:$0xff] (!%p260_p10)  ;;  %s1396_s30 = sshll.u32 (!%p260_p10), %s291_s23, 7 }
  0x10   : > { %353 = vperm.xlu0 (!%p260_p10), %1672, %v335_v0   ;;  %363 = vperm.xlu1 (!%p260_p10), %1673, %v337_v1   ;;  %v339_v6 = vld [vmem:[%s2263_s2 + $0x20] sm:$0xff] (!%p260_p10)  ;;  %v341_v11 = vld [vmem:[%s2263_s2 + $0x30] sm:$0xff] (!%p260_p10)  ;;  %v342_v12 = vld [vmem:[%s2263_s2 + $0x38] sm:$0xff] (!%p260_p10)  ;;  %s1453_s8 = sshll.u32 (!%p260_p10), %s1840_s27, 11  ;;  %s2215_s18 = scalar_lea.sflag (!%p260_p10), [#allocation3], %s291_s23 }
  0x11   : > { %1518 = vmatprep.mubr.bf16.mxu0 (!%p260_p10), %v1682_v3  ;;  %v343_v14 = vld [vmem:[%s2263_s2 + $0x40] sm:$0xff] (!%p260_p10)  ;;  %v344_v15 = vld [vmem:[%s2263_s2 + $0x48] sm:$0xff] (!%p260_p10)  ;;  %v345_v17 = vld [vmem:[%s2263_s2 + $0x50] sm:$0xff] (!%p260_p10)  ;;  %s2206_s17 = scalar_lea.hbm (!%p260_p10), %s2268_s7, %s1453_s8 }
  0x12   : > { %v346_v18 = vld [vmem:[%s2263_s2 + $0x58] sm:$0xff] (!%p260_p10)  ;;  %v347_v20 = vld [vmem:[%s2263_s2 + $0x60] sm:$0xff] (!%p260_p10)  ;;  %v348_v21 = vld [vmem:[%s2263_s2 + $0x68] sm:$0xff] (!%p260_p10) }
  0x13   : > { %v349_v23 = vld [vmem:[%s2263_s2 + $0x70] sm:$0xff] (!%p260_p10)  ;;  %v350_v24 = vld [vmem:[%s2263_s2 + $0x78] sm:$0xff] (!%p260_p10)  ;;  %v664_v26 = vld [vmem:[%s2265_s4] sm:$0xff] (!%p260_p10) }
  0x14   : > { %358 = vperm.xlu0 (!%p260_p10), %1672, %v336_v4   ;;  %368 = vperm.xlu1 (!%p260_p10), %1673, %v338_v5   ;;  %v665_v27 = vld [vmem:[%s2265_s4 + $0x8] sm:$0xff] (!%p260_p10)  ;;  %v666_v28 = vld [vmem:[%s2265_s4 + $0x10] sm:$0xff] (!%p260_p10)  ;;  %v667_v30 = vld [vmem:[%s2265_s4 + $0x18] sm:$0xff] (!%p260_p10) }
  0x15   : > { %v1683_v29 = vld [vmem:[%s2262_s1 + $0x8] sm:$0xff] (!%p260_p10)   ;;  %v1684_v31 = vld [vmem:[%s2262_s1 + $0x10] sm:$0xff] (!%p260_p10)   ;;  %v668_v32 = vld [vmem:[%s2265_s4 + $0x20] sm:$0xff] (!%p260_p10) }
  0x16   : > { %s295_s19 = scalar_select %p294_p11, %s1840_s27, 1  ;;  %v669_v33 = vld [vmem:[%s2265_s4 + $0x28] sm:$0xff]  ;;  %v670_v34 = vld [vmem:[%s2265_s4 + $0x30] sm:$0xff]  ;;  %v1685_v35 = vld [vmem:[%s2262_s1 + $0x18] sm:$0xff]  }
  0x17   : > { %v671_v36 = vld [vmem:[%s2265_s4 + $0x38] sm:$0xff]  ;;  %v1686_v37 = vld [vmem:[%s2262_s1 + $0x20] sm:$0xff]   ;;  %v673_v39 = vld [vmem:[%s2265_s4 + $0x48] sm:$0xff] }
  0x18   : > { %s1452_s10 = sshll.u32 %s295_s19, 6  ;;  %373 = vperm.xlu0 %1672, %v339_v6   ;;  %378 = vperm.xlu1 %1673, %v340_v9   ;;  %v672_v38 = vld [vmem:[%s2265_s4 + $0x40] sm:$0xff]  ;;  %v674_v40 = vld [vmem:[%s2265_s4 + $0x50] sm:$0xff]  ;;  %v1687_v41 = vld [vmem:[%s2262_s1 + $0x28] sm:$0xff]   ;;  %s1851_s19 = smov [#allocation2]  }
  0x19   : > { %s1969_s16 = scalar_lea.vmem %s2261_s0, %s1452_s10  ;;  %v675_v42 = vld [vmem:[%s2265_s4 + $0x58] sm:$0xff]  ;;  %v1688_v43 = vld [vmem:[%s2262_s1 + $0x30] sm:$0xff]   ;;  %v676_v44 = vld [vmem:[%s2265_s4 + $0x60] sm:$0xff]  ;;  %s1774_s20 = sshll.u32 %s1851_s19, 4  ;;  %s1775_s20 = int_to_ptr.vmem [resolvable:$false] %s1774_s20 }
  0x1a   : > { %v1674_v7 = vld [vmem:[%s1969_s16] sm:$0xff]   ;;  %v1675_v8 = vld [vmem:[%s1969_s16 + $0x8] sm:$0xff]   ;;  %v1676_v10 = vld [vmem:[%s1969_s16 + $0x10] sm:$0xff]   ;;  %s1776_s21 = scalar_lea.vmem %s1775_s20, 4096 }
  0x1b   : > { %1502 = vmatprep.subr.bf16.mxu0 %v1674_v7  ;;  %v1677_v13 = vld [vmem:[%s1969_s16 + $0x18] sm:$0xff]   ;;  %v1678_v16 = vld [vmem:[%s1969_s16 + $0x20] sm:$0xff]   ;;  %v1679_v19 = vld [vmem:[%s1969_s16 + $0x28] sm:$0xff]  }
  0x1c   : > { %1503 = vmatpush3.bf16.msra.mxu0 %v1674_v7  ;;  %383 = vperm.xlu0 %1672, %v341_v11   ;;  %v1680_v22 = vld [vmem:[%s1969_s16 + $0x30] sm:$0xff]   ;;  %v1681_v25 = vld [vmem:[%s1969_s16 + $0x38] sm:$0xff]   ;;  %v677_v45 = vld [vmem:[%s2265_s4 + $0x68] sm:$0xff]  ;;  %s2186_s16 = scalar_lea.vmem [#allocation2], %s1396_s30 }
  0x1d   : > { %1504 = vmatprep.subr.bf16.mxu0 %v1675_v8  ;;  %388 = vperm.xlu1 %1673, %v342_v12   ;;  %v678_v46 = vld [vmem:[%s2265_s4 + $0x70] sm:$0xff]  ;;  %v1689_v47 = vld [vmem:[%s2262_s1 + $0x38] sm:$0xff]   ;;  %v945_v49 = vld [vmem:[%s2267_s6] sm:$0xff]  ;;  %s1313_s10 = sshll.u32 %s2186_s16, 4  ;;  %s2208_s10 = int_to_ptr.vmem [resolvable:$true] %s1313_s10 }
  0x1e   : > { %v679_v48 = vld [vmem:[%s2265_s4 + $0x78] sm:$0xff]  ;;  %v946_v50 = vld [vmem:[%s2267_s6 + $0x8] sm:$0xff]  ;;  %v947_v51 = vld [vmem:[%s2267_s6 + $0x10] sm:$0xff]  ;;  %s1770_s27 = scalar_lea.vmem %s2208_s10, 2048  ;;  %p1777_p1 = scmp.lt.s32.totalorder %s2208_s10, %s1775_s20 }
  0x1f   : > { %v948_v52 = vld [vmem:[%s2267_s6 + $0x18] sm:$0xff]  ;;  %v949_v53 = vld [vmem:[%s2267_s6 + $0x20] sm:$0xff]  ;;  %v950_v54 = vld [vmem:[%s2267_s6 + $0x28] sm:$0xff]  ;;  %p1771_p12 = scmp.ne.s32.totalorder %s2208_s10, %s1770_s27  ;;  %p1778_p2 = scmp.lt.s32.totalorder %s1776_s21, %s1770_s27 }
  0x20   : > { %1505 = vmatpush3.bf16.msra.mxu0 %v1675_v8  ;;  %393 = vperm.xlu0 %1672, %v343_v14   ;;  %v951_v55 = vld [vmem:[%s2267_s6 + $0x30] sm:$0xff]  ;;  %v952_v56 = vld [vmem:[%s2267_s6 + $0x38] sm:$0xff]  ;;  %v953_v57 = vld [vmem:[%s2267_s6 + $0x40] sm:$0xff] }
  0x21   : > { %1506 = vmatprep.subr.bf16.mxu0 %v1676_v10  ;;  %398 = vperm.xlu1 %1673, %v344_v15   ;;  %v954_v58 = vld [vmem:[%s2267_s6 + $0x48] sm:$0xff]  ;;  %v955_v59 = vld [vmem:[%s2267_s6 + $0x50] sm:$0xff]  ;;  %v956_v60 = vld [vmem:[%s2267_s6 + $0x58] sm:$0xff]  ;;  %p1772_p13 = pnand %p1771_p12, %p1934_p4  ;;  %p1779_p3 = por %p1778_p2, %p1777_p1 }
  0x22   : > { %v957_v61 = vld [vmem:[%s2267_s6 + $0x60] sm:$0xff]  ;;  %v958_v62 = vld [vmem:[%s2267_s6 + $0x68] sm:$0xff]  ;;  %v959_v63 = vld [vmem:[%s2267_s6 + $0x70] sm:$0xff] }
  0x23   : > { %v960_v0 = vld [vmem:[%s2267_s6 + $0x78] sm:$0xff]  ;;  %v1690_v1 = vld [vmem:[%s2264_s3] sm:$0xff]   ;;  %p1773_p0 = pneg %p1772_p13 }
  0x24   : > { %1507 = vmatpush3.bf16.msra.mxu0 %v1676_v10  ;;  %403 = vperm.xlu0 %1672, %v345_v17  }
  0x25   : > { %1508 = vmatprep.subr.bf16.mxu0 %v1677_v13  ;;  %408 = vperm.xlu1 %1673, %v346_v18   ;;  %p1780_p5 = pnand %p1779_p3, %p1773_p0 }
  0x26   : > { %1550 = vmatprep.mubr.bf16.mxu1 %v1690_v1 }
  0x28   : > { %1509 = vmatpush3.bf16.msra.mxu0 %v1677_v13  ;;  %413 = vperm.xlu0 %1672, %v347_v20  }
  0x29   : > { %1510 = vmatprep.subr.bf16.mxu0 %v1678_v16  ;;  %418 = vperm.xlu1 %1673, %v348_v21  }
  0x2c   : > { %1511 = vmatpush3.bf16.msra.mxu0 %v1678_v16  ;;  %423 = vperm.xlu0 %1672, %v349_v23  }
  0x2d   : > { %1512 = vmatprep.subr.bf16.mxu0 %v1679_v19  ;;  %428 = vperm.xlu1 %1673, %v350_v24  }
  0x30   : > { %1513 = vmatpush3.bf16.msra.mxu0 %v1679_v19  ;;  %682 = vperm.xlu0 %1672, %v664_v26  }
  0x31   : > { %1514 = vmatprep.subr.bf16.mxu0 %v1680_v22  ;;  %687 = vperm.xlu1 %1673, %v665_v27  }
  0x34   : > { %1515 = vmatpush3.bf16.msra.mxu0 %v1680_v22  ;;  %692 = vperm.xlu0 %1672, %v666_v28  }
  0x35   : > { %1516 = vmatprep.subr.bf16.mxu0 %v1681_v25  ;;  %697 = vperm.xlu1 %1673, %v667_v30  }
  0x38   : > { %1517 = vmatpush3.bf16.msra.mxu0 %v1681_v25  ;;  %702 = vperm.xlu0 %1672, %v668_v32  }
  0x39   : > { %707 = vperm.xlu1 %1673, %v669_v33  }
  0x3b   : > { %1519 = vmatmul.mubr.bf16.vlgmr.msra.gmra.mrb[0].mxu0 %v1683_v29 }
  0x3c   : > { %1522 = vmatprep.mubr.bf16.mxu0 %v1684_v31  ;;  %712 = vperm.xlu0 %1672, %v670_v34  }
  0x3d   : > { %717 = vperm.xlu1 %1673, %v671_v36  }
  0x40   : > { %722 = vperm.xlu0 %1672, %v672_v38  }
  0x41   : > { %727 = vperm.xlu1 %1673, %v673_v39  }
  0x43   : > { %1523 = vmatmul.mubr.bf16.gmra.mrb[4].mxu0 %v1685_v35 }
  0x44   : > { %1526 = vmatprep.mubr.bf16.mxu0 %v1686_v37  ;;  %732 = vperm.xlu0 %1672, %v674_v40  }
  0x45   : > { %737 = vperm.xlu1 %1673, %v675_v42  }
  0x48   : > { %742 = vperm.xlu0 %1672, %v676_v44  }
  0x49   : > { %747 = vperm.xlu1 %1673, %v677_v45  }
  0x4b   : > { %1527 = vmatmul.mubr.bf16.gmra.mrb[8].mxu0 %v1687_v41 }
  0x4c   : > { %1530 = vmatprep.mubr.bf16.mxu0 %v1688_v43  ;;  %752 = vperm.xlu0 %1672, %v678_v46  }
  0x4d   : > { %757 = vperm.xlu1 %1673, %v679_v48  }
  0x50   : > { %963 = vperm.xlu0 %1672, %v945_v49  }
  0x51   : > { %968 = vperm.xlu1 %1673, %v946_v50  }
  0x53   : > { %1531 = vmatmul.mubr.bf16.gmra.mrb[12].mxu0 %v1689_v47 }
  0x54   : > { %973 = vperm.xlu0 %1672, %v947_v51  }
  0x55   : > { %978 = vperm.xlu1 %1673, %v948_v52  }
  0x58   : > { %983 = vperm.xlu0 %1672, %v949_v53  }
  0x59   : > { %988 = vperm.xlu1 %1673, %v950_v54  }
  0x5c   : > { %993 = vperm.xlu0 %1672, %v951_v55  }
  0x5d   : > { %998 = vperm.xlu1 %1673, %v952_v56  }
  0x60   : > { %1003 = vperm.xlu0 %1672, %v953_v57  }
  0x61   : > { %1008 = vperm.xlu1 %1673, %v954_v58  }
  0x64   : > { %1013 = vperm.xlu0 %1672, %v955_v59  }
  0x65   : > { %1018 = vperm.xlu1 %1673, %v956_v60  }
  0x68   : > { %1023 = vperm.xlu0 %1672, %v957_v61  }
  0x69   : > { %1028 = vperm.xlu1 %1673, %v958_v62  }
  0x6c   : > { %1033 = vperm.xlu0 %1672, %v959_v63  }
  0x6d   : > { %1038 = vperm.xlu1 %1673, %v960_v0  }
  0x8f   : > { %v354_v2 = vpop.permute.xlu0 %353  ;;  %v364_v3 = vpop.permute.xlu1 %363 }
  0x93   : > { %v359_v4 = vpop.permute.xlu0 %358  ;;  %v369_v5 = vpop.permute.xlu1 %368 }
  0x97   : > { %v374_v6 = vpop.permute.xlu0 %373  ;;  %v379_v7 = vpop.permute.xlu1 %378 }
  0x9b   : > { %v384_v8 = vpop.permute.xlu0 %383 }
  0x9c   : > { %v389_v12 = vpop.permute.xlu1 %388 }
  0x9f   : > { %v394_v20 = vpop.permute.xlu0 %393 }
  0xa0   : > { %v399_v24 = vpop.permute.xlu1 %398 }
  0xa3   : > { %v404_v33 = vpop.permute.xlu0 %403 }
  0xa4   : > { %v409_v37 = vpop.permute.xlu1 %408 }
  0xa7   : > { %v414_v45 = vpop.permute.xlu0 %413 }
  0xa8   : > { %v419_v50 = vpop.permute.xlu1 %418 }
  0xab   : > { %v424_v57 = vpop.permute.xlu0 %423 }
  0xac   : > { %v429_v62 = vpop.permute.xlu1 %428 }
 0x10e   : > { %v1520_v9 = vpop.f32.mrb[0].mxu0 }
 0x10f   : > { %v570_v10 = vadd.f32 %v1520_v9, %v364_v3  ;;  %v561_v11 = vpop.f32.mrb[1].mxu0 }
 0x110   : > { %v562_v13 = vadd.f32 %v561_v11, %v354_v2  ;;  %v1521_v14 = vpop.f32.mrb[2].mxu0  ;;  %v1692_v11 = vld [vmem:[%s2264_s3 + $0x10] sm:$0xff]  }
 0x111   : > { %v573_v15 = vadd.f32 %v1521_v14, %v369_v5  ;;  %v564_v16 = vpop.f32.mrb[3].mxu0  ;;  %v626_v18 = vmax.f32 %v570_v10, 0.0  ;;  %v1691_v10 = vld [vmem:[%s2264_s3 + $0x8] sm:$0xff]  }
 0x112   : > { %v565_v17 = vadd.f32 %v564_v16, %v359_v4  ;;  %v624_v21 = vmax.f32 %v562_v13, 0.0  ;;  %v1694_v13 = vld [vmem:[%s2264_s3 + $0x20] sm:$0xff]   ;;  %v1695_v14 = vld [vmem:[%s2264_s3 + $0x28] sm:$0xff]   ;;  %v1697_v16 = vld [vmem:[%s2264_s3 + $0x38] sm:$0xff]  }
 0x113   : > { %v627_v19 = vmax.f32 %v573_v15, 0.0  ;;  %v1696_v15 = vld [vmem:[%s2264_s3 + $0x30] sm:$0xff]  }
 0x114   : > { %v625_v22 = vmax.f32 %v565_v17, 0.0  ;;  %v1698_v17 = vld [vmem:[%s2266_s5] sm:$0xff]  }
 0x115   : > { %v657_v23 = vpack.c.bf16 %v627_v19, %v626_v18  ;;  %v1699_v18 = vld [vmem:[%s2266_s5 + $0x20] sm:$0xff]   ;;  %1582 = vmatprep.mubr.bf16.mxu0 %v1698_v17  ;;  %v683_v19 = vpop.permute.xlu0 %682 }
 0x116   : > { %v1524_v25 = vpop.f32.mrb[4].mxu0  ;;  %v656_v26 = vpack.c.bf16 %v625_v22, %v624_v21 }
 0x117   : > { %v586_v27 = vadd.f32 %v1524_v25, %v384_v8  ;;  %v577_v28 = vpop.f32.mrb[5].mxu0 }
 0x118   : > { %v578_v29 = vadd.f32 %v577_v28, %v374_v6  ;;  %v1525_v30 = vpop.f32.mrb[6].mxu0  ;;  %1534 = vmatprep.subr.bf16.mxu1 %v656_v26 }
 0x119   : > { %v589_v31 = vadd.f32 %v1525_v30, %v389_v12  ;;  %v580_v32 = vpop.f32.mrb[7].mxu0  ;;  %1535 = vmatpush3.bf16.msra.mxu1 %v656_v26  ;;  %v630_v35 = vmax.f32 %v586_v27, 0.0  ;;  %v1693_v12 = vld [vmem:[%s2264_s3 + $0x18] sm:$0xff]   ;;  %v693_v21 = vpop.permute.xlu0 %692 }
 0x11a   : > { %v581_v34 = vadd.f32 %v580_v32, %v379_v7  ;;  %1536 = vmatprep.subr.bf16.mxu1 %v657_v23  ;;  %v628_v38 = vmax.f32 %v578_v29, 0.0 }
 0x11b   : > { %v631_v36 = vmax.f32 %v589_v31, 0.0 }
 0x11c   : > { %v629_v39 = vmax.f32 %v581_v34, 0.0 }
 0x11d   : > { %v659_v40 = vpack.c.bf16 %v631_v36, %v630_v35  ;;  %1537 = vmatpush3.bf16.msra.mxu1 %v657_v23  ;;  %v703_v23 = vpop.permute.xlu0 %702 }
 0x11e   : > { %v658_v41 = vpack.c.bf16 %v629_v39, %v628_v38  ;;  %v1528_v42 = vpop.f32.mrb[8].mxu0 }
 0x11f   : > { %v602_v43 = vadd.f32 %v1528_v42, %v404_v33  ;;  %v593_v44 = vpop.f32.mrb[9].mxu0 }
 0x120   : > { %v594_v46 = vadd.f32 %v593_v44, %v394_v20  ;;  %v1529_v47 = vpop.f32.mrb[10].mxu0  ;;  %1538 = vmatprep.subr.bf16.mxu1 %v658_v41  ;;  %v688_v20 = vpop.permute.xlu1 %687 }
 0x121   : > { %v605_v48 = vadd.f32 %v1529_v47, %v409_v37  ;;  %v596_v49 = vpop.f32.mrb[11].mxu0  ;;  %1539 = vmatpush3.bf16.msra.mxu1 %v658_v41  ;;  %v634_v52 = vmax.f32 %v602_v43, 0.0  ;;  %v713_v25 = vpop.permute.xlu0 %712 }
 0x122   : > { %v597_v51 = vadd.f32 %v596_v49, %v399_v24  ;;  %1540 = vmatprep.subr.bf16.mxu1 %v659_v40  ;;  %v632_v54 = vmax.f32 %v594_v46, 0.0 }
 0x123   : > { %v635_v53 = vmax.f32 %v605_v48, 0.0 }
 0x124   : > { %v633_v55 = vmax.f32 %v597_v51, 0.0  ;;  %v698_v22 = vpop.permute.xlu1 %697 }
 0x125   : > { %v661_v56 = vpack.c.bf16 %v635_v53, %v634_v52  ;;  %1541 = vmatpush3.bf16.msra.mxu1 %v659_v40  ;;  %v723_v37 = vpop.permute.xlu0 %722 }
 0x126   : > { %v660_v58 = vpack.c.bf16 %v633_v55, %v632_v54  ;;  %v1532_v59 = vpop.f32.mrb[12].mxu0 }
 0x127   : > { %v618_v60 = vadd.f32 %v1532_v59, %v424_v57  ;;  %v609_v61 = vpop.f32.mrb[13].mxu0 }
 0x128   : > { %v610_v63 = vadd.f32 %v609_v61, %v414_v45  ;;  %v1533_v0 = vpop.f32.mrb[14].mxu0  ;;  %1542 = vmatprep.subr.bf16.mxu1 %v660_v58  ;;  %v708_v24 = vpop.permute.xlu1 %707 }
 0x129   : > { %v621_v1 = vadd.f32 %v1533_v0, %v429_v62  ;;  %v612_v2 = vpop.f32.mrb[15].mxu0  ;;  %1543 = vmatpush3.bf16.msra.mxu1 %v660_v58  ;;  %v638_v4 = vmax.f32 %v618_v60, 0.0 }
 0x12a   : > { %v613_v3 = vadd.f32 %v612_v2, %v419_v50  ;;  %1544 = vmatprep.subr.bf16.mxu1 %v661_v56  ;;  %v636_v6 = vmax.f32 %v610_v63, 0.0  ;;  %v733_v50 = vpop.permute.xlu0 %732 }
 0x12b   : > { %v639_v5 = vmax.f32 %v621_v1, 0.0 }
 0x12c   : > { %v637_v7 = vmax.f32 %v613_v3, 0.0  ;;  %v718_v29 = vpop.permute.xlu1 %717 }
 0x12d   : > { %v663_v8 = vpack.c.bf16 %v639_v5, %v638_v4  ;;  %1545 = vmatpush3.bf16.msra.mxu1 %v661_v56 }
 0x12e   : > { %v662_v9 = vpack.c.bf16 %v637_v7, %v636_v6  ;;  %v743_v62 = vpop.permute.xlu0 %742 }
 0x130   : > { %1546 = vmatprep.subr.bf16.mxu1 %v662_v9  ;;  %v728_v41 = vpop.permute.xlu1 %727 }
 0x131   : > { %1547 = vmatpush3.bf16.msra.mxu1 %v662_v9 }
 0x132   : > { %1548 = vmatprep.subr.bf16.mxu1 %v663_v8 }
 0x134   : > { %v738_v54 = vpop.permute.xlu1 %737 }
 0x135   : > { %1549 = vmatpush3.bf16.msra.mxu1 %v663_v8 }
 0x138   : > { %1551 = vmatmul.mubr.bf16.vlgmr.msra.gmra.mrb[0].mxu1 %v1691_v10  ;;  %v748_v3 = vpop.permute.xlu1 %747  ;;  %v753_v10 = vpop.permute.xlu0 %752 }
 0x139   : > { %1554 = vmatprep.mubr.bf16.mxu1 %v1692_v11 }
 0x140   : > { %1555 = vmatmul.mubr.bf16.gmra.mrb[4].mxu1 %v1693_v12 }
 0x141   : > { %1558 = vmatprep.mubr.bf16.mxu1 %v1694_v13 }
 0x148   : > { %1559 = vmatmul.mubr.bf16.gmra.mrb[8].mxu1 %v1695_v14 }
 0x149   : > { %1562 = vmatprep.mubr.bf16.mxu1 %v1696_v15  ;;  %v758_v15 = vpop.permute.xlu1 %757 }
 0x150   : > { %1563 = vmatmul.mubr.bf16.gmra.mrb[12].mxu1 %v1697_v16 }
 0x151   : > { %1590 = vmatprep.mubr.bf16.mxu1 %v1699_v18 }
 0x20b   : > { %v1552_v26 = vpop.f32.mrb[0].mxu1 }
 0x20c   : > { %v851_v27 = vadd.f32 %v1552_v26, %v693_v21  ;;  %v842_v28 = vpop.f32.mrb[1].mxu1 }
 0x20d   : > { %v843_v30 = vadd.f32 %v842_v28, %v683_v19  ;;  %v1553_v31 = vpop.f32.mrb[2].mxu1  ;;  %v1701_v28 = vld [vmem:[%s2266_s5 + $0x28] sm:$0xff]  }
 0x20e   : > { %v854_v32 = vadd.f32 %v1553_v31, %v698_v22  ;;  %v845_v33 = vpop.f32.mrb[3].mxu1  ;;  %v907_v35 = vmax.f32 %v851_v27, 0.0  ;;  %v1700_v27 = vld [vmem:[%s2266_s5 + $0x8] sm:$0xff]   ;;  %v1704_v31 = vld [vmem:[%s2266_s5 + $0x18] sm:$0xff]  }
 0x20f   : > { %v846_v34 = vadd.f32 %v845_v33, %v688_v20  ;;  %v905_v38 = vmax.f32 %v843_v30, 0.0  ;;  %v1703_v30 = vld [vmem:[%s2266_s5 + $0x30] sm:$0xff]   ;;  %v964_v33 = vpop.permute.xlu0 %963 }
 0x210   : > { %v908_v36 = vmax.f32 %v854_v32, 0.0  ;;  %v1705_v32 = vld [vmem:[%s2266_s5 + $0x38] sm:$0xff]  }
 0x211   : > { %v906_v39 = vmax.f32 %v846_v34, 0.0  ;;  %v969_v34 = vpop.permute.xlu1 %968 }
 0x212   : > { %v938_v40 = vpack.c.bf16 %v908_v36, %v907_v35 }
 0x213   : > { %v937_v42 = vpack.c.bf16 %v906_v39, %v905_v38  ;;  %v1556_v43 = vpop.f32.mrb[4].mxu1  ;;  %v974_v35 = vpop.permute.xlu0 %973 }
 0x214   : > { %v867_v44 = vadd.f32 %v1556_v43, %v713_v25  ;;  %v858_v45 = vpop.f32.mrb[5].mxu1 }
 0x215   : > { %v859_v46 = vadd.f32 %v858_v45, %v703_v23  ;;  %v1557_v47 = vpop.f32.mrb[6].mxu1  ;;  %1566 = vmatprep.subr.bf16.mxu0 %v937_v42  ;;  %1598 = vmatprep.subr.bf16.mxu1 %v937_v42  ;;  %v979_v36 = vpop.permute.xlu1 %978 }
 0x216   : > { %v870_v48 = vadd.f32 %v1557_v47, %v718_v29  ;;  %v861_v49 = vpop.f32.mrb[7].mxu1  ;;  %1567 = vmatpush3.bf16.msra.mxu0 %v937_v42  ;;  %1606 = vmatpush3.bf16.msra.mxu1 %v937_v42  ;;  %v911_v52 = vmax.f32 %v867_v44, 0.0  ;;  %v1702_v29 = vld [vmem:[%s2266_s5 + $0x10] sm:$0xff]  }
 0x217   : > { %v862_v51 = vadd.f32 %v861_v49, %v708_v24  ;;  %1568 = vmatprep.subr.bf16.mxu0 %v938_v40  ;;  %1599 = vmatprep.subr.bf16.mxu1 %v938_v40  ;;  %v909_v55 = vmax.f32 %v859_v46, 0.0 }
 0x218   : > { %v912_v53 = vmax.f32 %v870_v48, 0.0 }
 0x219   : > { %v910_v56 = vmax.f32 %v862_v51, 0.0  ;;  %v2180_v38 = vpop.permute.xlu1 %988 }
 0x21a   : > { %v940_v57 = vpack.c.bf16 %v912_v53, %v911_v52  ;;  %1569 = vmatpush3.bf16.msra.mxu0 %v938_v40  ;;  %1607 = vmatpush3.bf16.msra.mxu1 %v938_v40 }
 0x21b   : > { %v939_v58 = vpack.c.bf16 %v910_v56, %v909_v55  ;;  %v1560_v59 = vpop.f32.mrb[8].mxu1 }
 0x21c   : > { %v883_v60 = vadd.f32 %v1560_v59, %v733_v50  ;;  %v874_v61 = vpop.f32.mrb[9].mxu1 }
 0x21d   : > { %v875_v63 = vadd.f32 %v874_v61, %v723_v37  ;;  %v1561_v0 = vpop.f32.mrb[10].mxu1  ;;  %1570 = vmatprep.subr.bf16.mxu0 %v939_v58  ;;  %1600 = vmatprep.subr.bf16.mxu1 %v939_v58  ;;  %v984_v37 = vpop.permute.xlu0 %983 }
 0x21e   : > { %v886_v1 = vadd.f32 %v1561_v0, %v738_v54  ;;  %v877_v2 = vpop.f32.mrb[11].mxu1  ;;  %1571 = vmatpush3.bf16.msra.mxu0 %v939_v58  ;;  %1608 = vmatpush3.bf16.msra.mxu1 %v939_v58  ;;  %v915_v5 = vmax.f32 %v883_v60, 0.0  ;;  %v999_v40 = vpop.permute.xlu1 %998 }
 0x21f   : > { %v878_v4 = vadd.f32 %v877_v2, %v728_v41  ;;  %1572 = vmatprep.subr.bf16.mxu0 %v940_v57  ;;  %1601 = vmatprep.subr.bf16.mxu1 %v940_v57  ;;  %v913_v7 = vmax.f32 %v875_v63, 0.0 }
 0x220   : > { %v916_v6 = vmax.f32 %v886_v1, 0.0 }
 0x221   : > { %v914_v8 = vmax.f32 %v878_v4, 0.0  ;;  %v994_v39 = vpop.permute.xlu0 %993 }
 0x222   : > { %v942_v9 = vpack.c.bf16 %v916_v6, %v915_v5  ;;  %1573 = vmatpush3.bf16.msra.mxu0 %v940_v57  ;;  %1609 = vmatpush3.bf16.msra.mxu1 %v940_v57  ;;  %v1009_v42 = vpop.permute.xlu1 %1008 }
 0x223   : > { %v941_v11 = vpack.c.bf16 %v914_v8, %v913_v7  ;;  %v1564_v12 = vpop.f32.mrb[12].mxu1 }
 0x224   : > { %v899_v13 = vadd.f32 %v1564_v12, %v753_v10  ;;  %v890_v14 = vpop.f32.mrb[13].mxu1 }
 0x225   : > { %v891_v16 = vadd.f32 %v890_v14, %v743_v62  ;;  %v1565_v17 = vpop.f32.mrb[14].mxu1  ;;  %1574 = vmatprep.subr.bf16.mxu0 %v941_v11  ;;  %1602 = vmatprep.subr.bf16.mxu1 %v941_v11  ;;  %v1004_v41 = vpop.permute.xlu0 %1003 }
 0x226   : > { %v902_v18 = vadd.f32 %v1565_v17, %v758_v15  ;;  %v893_v19 = vpop.f32.mrb[15].mxu1  ;;  %1575 = vmatpush3.bf16.msra.mxu0 %v941_v11  ;;  %1610 = vmatpush3.bf16.msra.mxu1 %v941_v11  ;;  %v919_v21 = vmax.f32 %v899_v13, 0.0  ;;  %v1019_v44 = vpop.permute.xlu1 %1018 }
 0x227   : > { %v894_v20 = vadd.f32 %v893_v19, %v748_v3  ;;  %1576 = vmatprep.subr.bf16.mxu0 %v942_v9  ;;  %1603 = vmatprep.subr.bf16.mxu1 %v942_v9  ;;  %v917_v23 = vmax.f32 %v891_v16, 0.0 }
 0x228   : > { %v920_v22 = vmax.f32 %v902_v18, 0.0 }
 0x229   : > { %v918_v24 = vmax.f32 %v894_v20, 0.0  ;;  %v1014_v43 = vpop.permute.xlu0 %1013 }
 0x22a   : > { %v944_v25 = vpack.c.bf16 %v920_v22, %v919_v21  ;;  %1577 = vmatpush3.bf16.msra.mxu0 %v942_v9  ;;  %1611 = vmatpush3.bf16.msra.mxu1 %v942_v9 }
 0x22b   : > { %v943_v26 = vpack.c.bf16 %v918_v24, %v917_v23 }
 0x22d   : > { %1578 = vmatprep.subr.bf16.mxu0 %v943_v26  ;;  %1604 = vmatprep.subr.bf16.mxu1 %v943_v26  ;;  %v1024_v45 = vpop.permute.xlu0 %1023 }
 0x22e   : > { %1579 = vmatpush3.bf16.msra.mxu0 %v943_v26  ;;  %1612 = vmatpush3.bf16.msra.mxu1 %v943_v26 }
 0x22f   : > { %1580 = vmatprep.subr.bf16.mxu0 %v944_v25  ;;  %1605 = vmatprep.subr.bf16.mxu1 %v944_v25 }
 0x231   : > { %v1034_v4 = vpop.permute.xlu0 %1033 }
 0x232   : > { %1581 = vmatpush3.bf16.msra.mxu0 %v944_v25  ;;  %1613 = vmatpush3.bf16.msra.mxu1 %v944_v25 }
 0x235   : > { %1583 = vmatmul.mubr.bf16.vlgmr.msra.gmra.mrb[16].mxu0 %v1700_v27  ;;  %1591 = vmatmul.mubr.bf16.vlgmr.msra.gmra.mrb[16].mxu1 %v1701_v28  ;;  %v1029_v27 = vpop.permute.xlu1 %1028 }
 0x236   : > { %1586 = vmatprep.mubr.bf16.mxu0 %v1702_v29  ;;  %1594 = vmatprep.mubr.bf16.mxu1 %v1703_v30 }
 0x23d   : > { %1587 = vmatmul.mubr.bf16.gmra.mrb[20].mxu0 %v1704_v31  ;;  %1595 = vmatmul.mubr.bf16.gmra.mrb[20].mxu1 %v1705_v32 }
 0x308   : > { %v1584_v46 = vpop.f32.mrb[16].mxu0  ;;  %v1592_v47 = vpop.f32.mrb[16].mxu1 }
 0x309   : > { %v1132_v48 = vadd.f32 %v1584_v46, %v974_v35  ;;  %v1164_v49 = vadd.f32 %v1592_v47, %v1014_v43  ;;  %v1123_v50 = vpop.f32.mrb[17].mxu0  ;;  %v1155_v51 = vpop.f32.mrb[17].mxu1 }
 0x30a   : > { %v1124_v52 = vadd.f32 %v1123_v50, %v964_v33  ;;  %v1156_v53 = vadd.f32 %v1155_v51, %v1004_v41  ;;  %v1585_v54 = vpop.f32.mrb[18].mxu0  ;;  %v1593_v55 = vpop.f32.mrb[18].mxu1 }
 0x30b   : > { %v1433_v56 = vmul.f32 -1.442695, %v1132_v48  ;;  %v1441_v57 = vmul.f32 -1.442695, %v1164_v49  ;;  %v1135_v58 = vadd.f32 %v1585_v54, %v979_v36  ;;  %v1167_v59 = vadd.f32 %v1593_v55, %v1019_v44  ;;  %v1126_v60 = vpop.f32.mrb[19].mxu0  ;;  %v1158_v61 = vpop.f32.mrb[19].mxu1 }
 0x30c   : > { %v1431_v62 = vmul.f32 -1.442695, %v1124_v52  ;;  %v1439_v63 = vmul.f32 -1.442695, %v1156_v53  ;;  %v1127_v0 = vadd.f32 %v1126_v60, %v969_v34  ;;  %v1159_v1 = vadd.f32 %v1158_v61, %v1009_v42  ;;  %v1039_v41 = vpop.permute.xlu1 %1038 }
 0x30d   : > { %1706 = vpow2.f32 %v1433_v56  ;;  %v1434_v2 = vmul.f32 -1.442695, %v1135_v58  ;;  %v1442_v3 = vmul.f32 -1.442695, %v1167_v59 }
 0x30e   : > { %1708 = vpow2.f32 %v1441_v57  ;;  %v1432_v5 = vmul.f32 -1.442695, %v1127_v0  ;;  %v1440_v6 = vmul.f32 -1.442695, %v1159_v1 }
 0x30f   : > { %1710 = vpow2.f32 %v1431_v62 }
 0x310   : > { %1712 = vpow2.f32 %v1439_v63  ;;  %v1588_v7 = vpop.f32.mrb[20].mxu0  ;;  %v1596_v8 = vpop.f32.mrb[20].mxu1 }
 0x311   : > { %1714 = vpow2.f32 %v1434_v2  ;;  %v1148_v9 = vadd.f32 %v1588_v7, %v994_v39  ;;  %v1180_v10 = vadd.f32 %v1596_v8, %v1034_v4  ;;  %v1139_v11 = vpop.f32.mrb[21].mxu0  ;;  %v1171_v12 = vpop.f32.mrb[21].mxu1 }
 0x312   : > { %1716 = vpow2.f32 %v1442_v3  ;;  %v1140_v13 = vadd.f32 %v1139_v11, %v984_v37  ;;  %v1172_v14 = vadd.f32 %v1171_v12, %v1024_v45  ;;  %v1589_v15 = vpop.f32.mrb[22].mxu0  ;;  %v1597_v16 = vpop.f32.mrb[22].mxu1 }
 0x313   : > { %1718 = vpow2.f32 %v1432_v5  ;;  %v1437_v17 = vmul.f32 -1.442695, %v1148_v9  ;;  %v1445_v18 = vmul.f32 -1.442695, %v1180_v10  ;;  %v1151_v19 = vadd.f32 %v1589_v15, %v999_v40  ;;  %v1142_v20 = vpop.f32.mrb[23].mxu0  ;;  %v1174_v21 = vpop.f32.mrb[23].mxu1 }
 0x314   : > { %1720 = vpow2.f32 %v1440_v6  ;;  %v1435_v22 = vmul.f32 -1.442695, %v1140_v13  ;;  %v1443_v23 = vmul.f32 -1.442695, %v1172_v14  ;;  %v1183_v45 = vadd.f32 %v1597_v16, %v1039_v41 }
 0x315   : > { %1722 = vpow2.f32 %v1437_v17  ;;  %v1438_v24 = vmul.f32 -1.442695, %v1151_v19  ;;  %v1143_v48 = vadd.f32 %v1142_v20, %v2180_v38  ;;  %v1175_v51 = vadd.f32 %v1174_v21, %v1029_v27 }
 0x316   : > { %1724 = vpow2.f32 %v1445_v18  ;;  %v1446_v56 = vmul.f32 -1.442695, %v1183_v45 }
 0x317   : > { %v1707_v25 = vpop.eup %1706  ;;  %1726 = vpow2.f32 %v1435_v22  ;;  %v1436_v59 = vmul.f32 -1.442695, %v1143_v48  ;;  %v1444_v38 = vmul.f32 -1.442695, %v1175_v51 }
 0x318   : > { %v1709_v26 = vpop.eup %1708  ;;  %v1236_v28 = vadd.f32 1.0, %v1707_v25  ;;  %1728 = vpow2.f32 %v1443_v23 }
 0x319   : > { %v1711_v29 = vpop.eup %1710  ;;  %v1244_v30 = vadd.f32 1.0, %v1709_v26  ;;  %1730 = vpow2.f32 %v1438_v24 }
 0x31a   : > { %v1713_v31 = vpop.eup %1712  ;;  %1732 = vrcp.f32 %v1236_v28  ;;  %v1234_v32 = vadd.f32 1.0, %v1711_v29 }
 0x31b   : > { %v1715_v33 = vpop.eup %1714  ;;  %1734 = vrcp.f32 %v1244_v30  ;;  %v1242_v34 = vadd.f32 1.0, %v1713_v31 }
 0x31c   : > { %v1717_v35 = vpop.eup %1716  ;;  %1736 = vrcp.f32 %v1234_v32  ;;  %v1237_v36 = vadd.f32 1.0, %v1715_v33 }
 0x31d   : > { %v1719_v37 = vpop.eup %1718  ;;  %1738 = vrcp.f32 %v1242_v34  ;;  %v1245_v39 = vadd.f32 1.0, %v1717_v35 }
 0x31e   : > { %v1721_v40 = vpop.eup %1720  ;;  %1740 = vrcp.f32 %v1237_v36  ;;  %v1235_v42 = vadd.f32 1.0, %v1719_v37 }
 0x31f   : > { %v1723_v43 = vpop.eup %1722  ;;  %1742 = vrcp.f32 %v1245_v39  ;;  %v1243_v44 = vadd.f32 1.0, %v1721_v40 }
 0x320   : > { %v1725_v46 = vpop.eup %1724  ;;  %1744 = vrcp.f32 %v1235_v42  ;;  %v1240_v47 = vadd.f32 1.0, %v1723_v43 }
 0x321   : > { %v1727_v49 = vpop.eup %1726  ;;  %1746 = vrcp.f32 %v1243_v44  ;;  %v1248_v50 = vadd.f32 1.0, %v1725_v46 }
 0x322   : > { %v1729_v52 = vpop.eup %1728  ;;  %1748 = vrcp.f32 %v1240_v47  ;;  %v1238_v53 = vadd.f32 1.0, %v1727_v49 }
 0x323   : > { %v1731_v54 = vpop.eup %1730  ;;  %1750 = vrcp.f32 %v1248_v50  ;;  %v1246_v55 = vadd.f32 1.0, %v1729_v52 }
 0x324   : > { %v1733_v57 = vpop.eup %1732  ;;  %1752 = vrcp.f32 %v1238_v53  ;;  %v1241_v58 = vadd.f32 1.0, %v1731_v54 }
 0x325   : > { %v1735_v60 = vpop.eup %1734  ;;  %1284 = vst [vmem:[%s2186_s16 + $0x10] sm:$0xff] %v1733_v57  ;;  %1754 = vrcp.f32 %v1246_v55 }
 0x326   : > { %v1737_v61 = vpop.eup %1736  ;;  %1292 = vst [vmem:[%s2186_s16 + $0x50] sm:$0xff] %v1735_v60  ;;  %1756 = vrcp.f32 %v1241_v58 }
 0x327   : > { %v1739_v62 = vpop.eup %1738  ;;  %1282 = vst [vmem:[%s2186_s16] sm:$0xff] %v1737_v61  ;;  %1758 = vpow2.f32 %v1446_v56 }
 0x328   : > { %v1741_v63 = vpop.eup %1740  ;;  %1290 = vst [vmem:[%s2186_s16 + $0x40] sm:$0xff] %v1739_v62  ;;  %1760 = vpow2.f32 %v1436_v59 }
 0x329   : > { %v1743_v0 = vpop.eup %1742  ;;  %1285 = vst [vmem:[%s2186_s16 + $0x18] sm:$0xff] %v1741_v63  ;;  %1762 = vpow2.f32 %v1444_v38 }
 0x32a   : > { %v1745_v1 = vpop.eup %1744  ;;  %1293 = vst [vmem:[%s2186_s16 + $0x58] sm:$0xff] %v1743_v0 }
 0x32b   : > { %v1747_v2 = vpop.eup %1746  ;;  %1283 = vst [vmem:[%s2186_s16 + $0x8] sm:$0xff] %v1745_v1 }
 0x32c   : > { %v1749_v3 = vpop.eup %1748  ;;  %1291 = vst [vmem:[%s2186_s16 + $0x48] sm:$0xff] %v1747_v2 }
 0x32d   : > { %v1751_v4 = vpop.eup %1750  ;;  %1288 = vst [vmem:[%s2186_s16 + $0x30] sm:$0xff] %v1749_v3 }
 0x32e   : > { %v1753_v5 = vpop.eup %1752  ;;  %1296 = vst [vmem:[%s2186_s16 + $0x70] sm:$0xff] %v1751_v4 }
 0x32f   : > { %v1755_v6 = vpop.eup %1754  ;;  %1286 = vst [vmem:[%s2186_s16 + $0x20] sm:$0xff] %v1753_v5 }
 0x330   : > { %v1757_v7 = vpop.eup %1756  ;;  %1294 = vst [vmem:[%s2186_s16 + $0x60] sm:$0xff] %v1755_v6 }
 0x331   : > { %v1759_v8 = vpop.eup %1758  ;;  %1289 = vst [vmem:[%s2186_s16 + $0x38] sm:$0xff] %v1757_v7 }
 0x332   : > { %v1761_v9 = vpop.eup %1760  ;;  %v1249_v10 = vadd.f32 1.0, %v1759_v8 }
 0x333   : > { %v1763_v11 = vpop.eup %1762  ;;  %v1239_v12 = vadd.f32 1.0, %v1761_v9 }
 0x334   : > { %1764 = vrcp.f32 %v1249_v10  ;;  %v1247_v13 = vadd.f32 1.0, %v1763_v11 }
 0x335   : > { %1766 = vrcp.f32 %v1239_v12 }
 0x336   : > { %1768 = vrcp.f32 %v1247_v13 }
 0x33e   : > { %v1765_v14 = vpop.eup %1764 }
 0x33f   : > { %v1767_v15 = vpop.eup %1766  ;;  %1297 = vst [vmem:[%s2186_s16 + $0x78] sm:$0xff] %v1765_v14 }
 0x340   : > { %v1769_v16 = vpop.eup %1768  ;;  %1287 = vst [vmem:[%s2186_s16 + $0x28] sm:$0xff] %v1767_v15 }
 0x341   : > { %1295 = vst [vmem:[%s2186_s16 + $0x68] sm:$0xff] %v1769_v16 }
 0x342   : > { %1783 = shalt.err (!%p1780_p5)
}
 0x343   : > { %s1784_s22 = scalar_lea.hbm %s2206_s17, 2048  ;;  %s1788_s16 = scalar_lea.hbm %s2268_s7, 4096 }
 0x344   : > { %p1785_p6 = scmp.ne.s32.totalorder %s2206_s17, %s1784_s22  ;;  %p1789_p10 = scmp.lt.u32.totalorder %s2206_s17, %s2268_s7 }
 0x345   : > { %p1790_p11 = scmp.lt.u32.totalorder %s1788_s16, %s1784_s22  ;;  %p1792_p13 = scmp.lt.u32.totalorder %s1784_s22, %s2206_s17 }
 0x346   : > { %p1786_p7 = pnand %p1785_p6, %p1934_p4 }
 0x347   : > { %p1791_p12 = por %p1790_p11, %p1789_p10 }
 0x348   : > { %p1787_p9 = pneg %p1786_p7 }
 0x349   : > { %p1793_p0 = por %p1792_p13, %p1791_p12 }
 0x34b   : > { %p1794_p1 = pnand %p1793_p0, %p1787_p9 }
 0x34d   : > { %1797 = shalt.err (!%p1794_p1)
}
 0x34e   : > { %s1852_s15 = smov 128   ;;  %s1853_s27 = smov 8  }
 0x34f   : > { %1614 = dma.vmem_to_hbm [thread:$0]  (%p1934_p4), %s2208_s10, 2048, %s2206_s17, %s2215_s18, %s1852_s15, %s1852_s15, %s1853_s27  }
 0x350 PF: > { %p1620_p2 = scmp.ge.s32.totalorder %s1848_s29, 2  ;;  %s1328_s19 = sand.u32 1, %s1828_s24  }
 0x351   : > { %s1329_s20 = scalar_lea.sflag [#allocation3], %s1328_s19 }
 0x352   : > { %p1617_p3 = pnand %p1620_p2, %p1941_p8 }
 0x354   : > { %1823 = dma.done.wait (!%p1617_p3), %s1329_s20, 2048  }
 0x355   : > { %1825 = vsyncadd (!%p1617_p3), %s1329_s20, 4294965248  ;;  %s20_s29 = sadd.s32 1, %s1848_s29   ;;  %s2271_s24 = smov %s1832_s25 }
 0x356   : > { %p17_p5 = scmp.ge.s32.totalorder %s20_s29, 4   ;;  %s2272_s25 = smov %s1836_s26 }
 0x357   : > { %s2273_s26 = smov %s1947_s14  ;;  %s2274_s27 = smov %s1844_s28 }
 0x358   : > { %s2275_s28 = smov %s2277_s9  ;;  %19 = sbr.rel (!%p17_p5) target bundleno = 4 (0x4), region = 83 }
 0x35f   :  { %1334 = vsyncpa [#allocation3], 1 }
 0x360   :  { %1336 = vsyncpa [#allocation3 + $0x1], 1 }

</bundles_post_ra>
